<compile_context>
chip_gen: v7x
topology: tpu7x:2x2x1
jax: 0.10.0
libtpu: 0.0.40
codegen_flags: <defaults>
</compile_context>

<pallas_src>
import math

import jax
import jax.numpy as jnp
from jax.experimental import pallas as pl
from jax.experimental.pallas import tpu as pltpu


# ------------------------------ Pallas kernel -------------------------------

def _domain_gate_kernel(cd_ref, cs_ref, wl_ref, vsum_ref, ws1_ref, ws2_ref,
                        o_ref):
    # cd_ref  : (TB, Hp)     f32   domain vectors for this batch tile
    # cs_ref  : (TB, J, Hp)  f32   slot contexts for this batch tile
    # wl_ref  : (Hp, Hp)     bf16  W_linear  (stored in x out)
    # vsum_ref: (1, Hp)      f32   V.sum(out-axis)  (row-sum trick, f32)
    # ws1_ref : (Hp, Hp)     bf16  s_trans rows [0:H)   (applied to C_slot)
    # ws2_ref : (Hp, Hp)     bf16  s_trans rows [H:2H)  (applied via g*(cd@Ws2))
    # o_ref   : (TB, J, Hp)  f32
    bf16 = jnp.bfloat16
    tb, j, hp = cs_ref.shape

    cd = cd_ref[...]                                    # (TB, Hp)     f32
    cs = cs_ref[...]                                    # (TB, J, Hp)  f32
    cd_b = cd.astype(bf16)

    # Batched per-domain matvecs: one MXU call each for all TB rows.
    ci_w = jnp.dot(cd_b, wl_ref[...],
                   preferred_element_type=jnp.float32)   # (TB, Hp)
    cdw2 = jnp.dot(cd_b, ws2_ref[...],
                   preferred_element_type=jnp.float32)   # (TB, Hp)

    # contact = tanh(C_slot + CI_w)  (f32 epilogue; tanh -> EUP, v5e-safe)
    contact = jnp.tanh(cs + ci_w[:, None, :])            # (TB, J, Hp)

    # g = (contact @ V).sum(-1) == contact @ v_sum  -> VPU mult + lane reduce
    g = jnp.sum(contact * vsum_ref[...], axis=-1, keepdims=True)  # (TB, J, 1)

    # S = C_slot @ Ws1 + g * (C_domain @ Ws2)   (temp matmul folded away)
    s = jnp.dot(cs.reshape(tb * j, hp).astype(bf16), ws1_ref[...],
                preferred_element_type=jnp.float32).reshape(tb, j, hp)
    s = s + g * cdw2[:, None, :]
    o_ref[...] = s.astype(o_ref.dtype)


# ------------------------------- wrapper ------------------------------------

def _round_up(x, m):
    return ((x + m - 1) // m) * m


def domain_gate(params, c_domain, c_slot, *, target_rows=256):
    """c_domain: (B, H) f32, c_slot: (B, J, H) f32 -> S: (B, J, H) f32."""
    B, H = c_domain.shape
    _, J, _ = c_slot.shape

    bf16 = jnp.bfloat16
    Hp = _round_up(H, 128)          # lane-dense layout (no-op when H % 128 == 0)
    pad = Hp - H

    def pad_last(x):
        if pad == 0:
            return x
        cfg = [(0, 0)] * (x.ndim - 1) + [(0, pad)]
        return jnp.pad(x, cfg)

    def pad_mat(w):                 # (H, H) -> (Hp, Hp), zero-padded
        return jnp.pad(w, ((0, pad), (0, pad))) if pad else w

    # Weight prep (done once per call; trivially CSE'd/hoisted under jit).
    w_lin = pad_mat(params["w_linear"]).astype(bf16)              # (Hp, Hp)
    w_s1 = pad_mat(params["w_s_trans"][:H]).astype(bf16)          # (Hp, Hp)
    w_s2 = pad_mat(params["w_s_trans"][H:]).astype(bf16)          # (Hp, Hp)
    # Row-sum trick: (x @ V).sum(-1) == x @ V.sum(axis=1); keep it f32.
    v_sum = pad_last(params["w_v"].sum(axis=1)).reshape(1, Hp)    # (1, Hp) f32

    cd = pad_last(c_domain)                                       # (B, Hp)
    cs = pad_last(c_slot)                                         # (B, J, Hp)

    # Batch-tile size: aim for ~target_rows MXU rows per grid step while
    # keeping the second-minor block dim legal (== B or a multiple of 8).
    target_b = max(1, target_rows // max(J, 1))
    cand = [d for d in range(1, B + 1)
            if B % d == 0 and d <= target_b and (d == B or d % 8 == 0)]
    tb = max(cand) if cand else B
    grid = (B // tb,)

    def weight_spec(shape):
        return pl.BlockSpec(shape, lambda i: (0,) * len(shape))
    # TODO(synk): for large H on v7x (64 MiB VMEM) / v5e (16 MiB scoped
    # default), mark the grid-invariant weight specs pipeline_mode=
    # pl.Buffered(1) (or raise vmem_limit_bytes) so they are not
    # double-buffered; irrelevant at these shapes.

    out = pl.pallas_call(
        _domain_gate_kernel,
        out_shape=jax.ShapeDtypeStruct((B, J, Hp), jnp.float32),
        grid=grid,
        in_specs=[
            pl.BlockSpec((tb, Hp), lambda i: (i, 0)),         # C_domain tile
            pl.BlockSpec((tb, J, Hp), lambda i: (i, 0, 0)),   # C_slot tile
            weight_spec((Hp, Hp)),                            # W_linear
            weight_spec((1, Hp)),                             # V row-sum
            weight_spec((Hp, Hp)),                            # s_trans top half
            weight_spec((Hp, Hp)),                            # s_trans bottom half
        ],
        out_specs=pl.BlockSpec((tb, J, Hp), lambda i: (i, 0, 0)),
        compiler_params=pltpu.CompilerParams(
            dimension_semantics=("parallel",)),
    )(cd, cs, w_lin, v_sum, w_s1, w_s2)

    return out[..., :H] if pad else out


# ------------------------- params / pure-JAX reference ----------------------

def init_params(key, hidden_size):
    """Weights stored as (in_features, out_features) == PyTorch weight^T."""
    H = hidden_size
    b1 = 1.0 / math.sqrt(H)
    b2 = 1.0 / math.sqrt(2 * H)
    k1, k2, k3, k4 = jax.random.split(key, 4)
    return {
        "w_linear": jax.random.uniform(k1, (H, H), jnp.float32, -b1, b1),
        "w_v":      jax.random.uniform(k2, (H, H), jnp.float32, -b1, b1),
        # W_DS exists in the PyTorch module but is never used in forward.
        "w_ds":     jax.random.uniform(k3, (H, H), jnp.float32, -b1, b1),
        "w_s_trans": jax.random.uniform(k4, (2 * H, H), jnp.float32, -b2, b2),
    }


def domain_gate_ref(params, c_domain, c_slot):
    ci_w = c_domain @ params["w_linear"]                       # (B, H)
    contact = jnp.tanh(c_slot + ci_w[:, None, :])              # (B, J, H)
    g = (contact @ params["w_v"]).sum(-1, keepdims=True)       # (B, J, 1)
    temp = g * c_domain[:, None, :]                            # (B, J, H)
    s_cat = jnp.concatenate([c_slot, temp], axis=-1)           # (B, J, 2H)
    return s_cat @ params["w_s_trans"]                         # (B, J, H)


# --------------------------------- main --------------------------------------

if __name__ == "__main__":
    B, J, H = 2, 8, 32

    key = jax.random.PRNGKey(0)
    kp, kd, ks = jax.random.split(key, 3)

    params = init_params(kp, H)
    c_domain = jax.random.normal(kd, (B, H), dtype=jnp.float32)
    c_slot = jax.random.normal(ks, (B, J, H), dtype=jnp.float32)

    fwd = jax.jit(domain_gate)
    S = fwd(params, c_domain, c_slot)
    jax.block_until_ready(S)

    assert S.shape == (B, J, H)

    # loose tolerance: kernel uses bf16 MXU operands with f32 accumulation
    S_ref = domain_gate_ref(params, c_domain, c_slot)
    assert jnp.allclose(S, S_ref, atol=1e-1, rtol=1e-1), \
        f"max abs diff {jnp.max(jnp.abs(S - S_ref))}"

    print("KERNEL_OK")
</pallas_src>

<mosaic_0001>
module attributes {stable_mosaic.version = 11 : i64} {
  func.func @_domain_gate_kernel(%arg0: i32, %arg1: memref<2x128xf32, #tpu.memory_space<vmem>>, %arg2: memref<2x8x128xf32, #tpu.memory_space<vmem>>, %arg3: memref<128x128xbf16, #tpu.memory_space<vmem>>, %arg4: memref<1x128xf32, #tpu.memory_space<vmem>>, %arg5: memref<128x128xbf16, #tpu.memory_space<vmem>>, %arg6: memref<128x128xbf16, #tpu.memory_space<vmem>>, %arg7: memref<2x8x128xf32, #tpu.memory_space<vmem>>) attributes {dimension_semantics = [#tpu.dimension_semantics<parallel>], iteration_bounds = array<i64: 1>, scalar_prefetch = 0 : i64, scratch_operands = 0 : i64, tpu.core_type = #tpu.core_type<tc>, window_params = [{transform_indices = @transform_0, window_bounds = array<i64: 2, 128>}, {transform_indices = @transform_1, window_bounds = array<i64: 2, 8, 128>}, {pipeline_mode = #tpu.pipeline_mode<synchronous>, transform_indices = @transform_2, window_bounds = array<i64: 128, 128>}, {pipeline_mode = #tpu.pipeline_mode<synchronous>, transform_indices = @transform_3, window_bounds = array<i64: 1, 128>}, {pipeline_mode = #tpu.pipeline_mode<synchronous>, transform_indices = @transform_4, window_bounds = array<i64: 128, 128>}, {pipeline_mode = #tpu.pipeline_mode<synchronous>, transform_indices = @transform_5, window_bounds = array<i64: 128, 128>}, {transform_indices = @transform_6, window_bounds = array<i64: 2, 8, 128>}]} {
    %c0 = arith.constant 0 : index
    %c0_0 = arith.constant 0 : index
    %0 = vector.load %arg1[%c0, %c0_0] : memref<2x128xf32, #tpu.memory_space<vmem>>, vector<2x128xf32>
    %c0_1 = arith.constant 0 : index
    %c0_2 = arith.constant 0 : index
    %c0_3 = arith.constant 0 : index
    %1 = vector.load %arg2[%c0_1, %c0_2, %c0_3] : memref<2x8x128xf32, #tpu.memory_space<vmem>>, vector<2x8x128xf32>
    %2 = arith.truncf %0 : vector<2x128xf32> to vector<2x128xbf16>
    %c0_4 = arith.constant 0 : index
    %c0_5 = arith.constant 0 : index
    %3 = vector.load %arg3[%c0_4, %c0_5] : memref<128x128xbf16, #tpu.memory_space<vmem>>, vector<128x128xbf16>
    %cst = arith.constant dense<0.000000e+00> : vector<2x128xf32>
    %4 = tpu.matmul %2, %3, %cst {dimension_numbers = #tpu.dot_dimension_numbers<[1], [0], [0], [1], [0, 0, 1, 1], [], []>} : vector<2x128xbf16>, vector<128x128xbf16>, vector<2x128xf32> -> vector<2x128xf32>
    %c0_6 = arith.constant 0 : index
    %c0_7 = arith.constant 0 : index
    %5 = vector.load %arg6[%c0_6, %c0_7] : memref<128x128xbf16, #tpu.memory_space<vmem>>, vector<128x128xbf16>
    %cst_8 = arith.constant dense<0.000000e+00> : vector<2x128xf32>
    %6 = tpu.matmul %2, %5, %cst_8 {dimension_numbers = #tpu.dot_dimension_numbers<[1], [0], [0], [1], [0, 0, 1, 1], [], []>} : vector<2x128xbf16>, vector<128x128xbf16>, vector<2x128xf32> -> vector<2x128xf32>
    %7 = vector.shape_cast %4 : vector<2x128xf32> to vector<2x1x128xf32>
    %8 = vector.broadcast %7 : vector<2x1x128xf32> to vector<2x8x128xf32>
    %9 = arith.addf %1, %8 : vector<2x8x128xf32>
    %10 = math.tanh %9 : vector<2x8x128xf32>
    %c0_9 = arith.constant 0 : index
    %c0_10 = arith.constant 0 : index
    %11 = vector.load %arg4[%c0_9, %c0_10] : memref<1x128xf32, #tpu.memory_space<vmem>>, vector<1x128xf32>
    %12 = vector.shape_cast %11 : vector<1x128xf32> to vector<1x1x128xf32>
    %13 = vector.broadcast %12 : vector<1x1x128xf32> to vector<2x8x128xf32>
    %14 = arith.mulf %10, %13 : vector<2x8x128xf32>
    %cst_11 = arith.constant dense<0.000000e+00> : vector<2x8xf32>
    %15 = vector.multi_reduction <add>, %14, %cst_11 [2] : vector<2x8x128xf32> to vector<2x8xf32>
    %16 = vector.shape_cast %15 : vector<2x8xf32> to vector<2x8x1xf32>
    %17 = vector.shape_cast %1 : vector<2x8x128xf32> to vector<16x128xf32>
    %18 = arith.truncf %17 : vector<16x128xf32> to vector<16x128xbf16>
    %c0_12 = arith.constant 0 : index
    %c0_13 = arith.constant 0 : index
    %19 = vector.load %arg5[%c0_12, %c0_13] : memref<128x128xbf16, #tpu.memory_space<vmem>>, vector<128x128xbf16>
    %cst_14 = arith.constant dense<0.000000e+00> : vector<16x128xf32>
    %20 = tpu.matmul %18, %19, %cst_14 {dimension_numbers = #tpu.dot_dimension_numbers<[1], [0], [0], [1], [0, 0, 1, 1], [], []>} : vector<16x128xbf16>, vector<128x128xbf16>, vector<16x128xf32> -> vector<16x128xf32>
    %21 = vector.shape_cast %20 : vector<16x128xf32> to vector<2x8x128xf32>
    %22 = vector.shape_cast %6 : vector<2x128xf32> to vector<2x1x128xf32>
    %23 = vector.broadcast %16 : vector<2x8x1xf32> to vector<2x8x128xf32>
    %24 = vector.broadcast %22 : vector<2x1x128xf32> to vector<2x8x128xf32>
    %25 = arith.mulf %23, %24 : vector<2x8x128xf32>
    %26 = arith.addf %21, %25 : vector<2x8x128xf32>
    %c0_15 = arith.constant 0 : index
    %c0_16 = arith.constant 0 : index
    %c0_17 = arith.constant 0 : index
    %27 = vector.load %arg7[%c0_15, %c0_16, %c0_17] : memref<2x8x128xf32, #tpu.memory_space<vmem>>, vector<2x8x128xf32>
    tpu.vector_store %arg7[%c0_15, %c0_16, %c0_17], %26 {strides = array<i32>} : memref<2x8x128xf32, #tpu.memory_space<vmem>>, vector<2x8x128xf32>,
    return
  }
  func.func @transform_0(%arg0: i32) -> (i32, i32) {
    %c0_i32 = arith.constant 0 : i32
    %c0_i32_0 = arith.constant 0 : i32
    return %arg0, %c0_i32 : i32, i32
  }
  func.func @transform_1(%arg0: i32) -> (i32, i32, i32) {
    %c0_i32 = arith.constant 0 : i32
    %c0_i32_0 = arith.constant 0 : i32
    %c0_i32_1 = arith.constant 0 : i32
    return %arg0, %c0_i32, %c0_i32_0 : i32, i32, i32
  }
  func.func @transform_2(%arg0: i32) -> (i32, i32) {
    %c0_i32 = arith.constant 0 : i32
    %c0_i32_0 = arith.constant 0 : i32
    %c0_i32_1 = arith.constant 0 : i32
    return %c0_i32, %c0_i32_0 : i32, i32
  }
  func.func @transform_3(%arg0: i32) -> (i32, i32) {
    %c0_i32 = arith.constant 0 : i32
    %c0_i32_0 = arith.constant 0 : i32
    %c0_i32_1 = arith.constant 0 : i32
    return %c0_i32, %c0_i32_0 : i32, i32
  }
  func.func @transform_4(%arg0: i32) -> (i32, i32) {
    %c0_i32 = arith.constant 0 : i32
    %c0_i32_0 = arith.constant 0 : i32
    %c0_i32_1 = arith.constant 0 : i32
    return %c0_i32, %c0_i32_0 : i32, i32
  }
  func.func @transform_5(%arg0: i32) -> (i32, i32) {
    %c0_i32 = arith.constant 0 : i32
    %c0_i32_0 = arith.constant 0 : i32
    %c0_i32_1 = arith.constant 0 : i32
    return %c0_i32, %c0_i32_0 : i32, i32
  }
  func.func @transform_6(%arg0: i32) -> (i32, i32, i32) {
    %c0_i32 = arith.constant 0 : i32
    %c0_i32_0 = arith.constant 0 : i32
    %c0_i32_1 = arith.constant 0 : i32
    return %arg0, %c0_i32, %c0_i32_0 : i32, i32, i32
  }
}

</mosaic_0001>

<bundles_post_ra>
// kernel: domain_gate.1
= control target key start
LH: loop header
LB: loop body
LE: loop exit
PB: predicated region body
PF: predicated region fallthrough
CT: control target
= control target key end

     0   :  { %v618_v1 = vmov 0.0   ;;  %vm619_vm0 = vmmov 0   ;;  %s785_s0 = inlined_call_operand.vmem [shape: f32[2,128], index: 0, kind: input, shape index: {}]   ;;  %s786_s1 = inlined_call_operand.vmem [shape: f32[2,8,128], index: 1, kind: input, shape index: {}]   ;;  %s787_s2 = inlined_call_operand.vmem [shape: bf16[128,128], index: 2, kind: input, shape index: {}]   ;;  %s788_s3 = inlined_call_operand.vmem [shape: f32[1,128], index: 3, kind: input, shape index: {}]   ;;  %s789_s4 = inlined_call_operand.vmem [shape: bf16[128,128], index: 4, kind: input, shape index: {}]   ;;  %s790_s5 = inlined_call_operand.vmem [shape: bf16[128,128], index: 5, kind: input, shape index: {}]   ;;  %s791_s6 = inlined_call_operand.hbm [shape: f32[2,8,128], index: 6, kind: output, shape index: {}]  }
   0x1   :  { %v566_v0 = vld [vmem:[%s787_s2] sm:$0xff]   ;;  %500 = vmatprep.subr.bf16.mxu0 %v618_v1  ;;  %520 = vmatprep.subr.bf16.mxu1 %v618_v1  ;;  %v567_v2 = vld [vmem:[%s787_s2 + $0x8] sm:$0xff]   ;;  %v568_v3 = vld [vmem:[%s787_s2 + $0x10] sm:$0xff]  }
   0x2   :  { %501 = vmatpush3.bf16.msra.mxu0 %v566_v0  ;;  %516 = vmatprep.mubr.msk.bf16.mxu0 %vm619_vm0, %v618_v1  ;;  %v574_v4 = vld [vmem:[%s790_s5] sm:$0xff]   ;;  %v569_v5 = vld [vmem:[%s787_s2 + $0x18] sm:$0xff]   ;;  %v575_v6 = vld [vmem:[%s790_s5 + $0x8] sm:$0xff]  }
   0x3   :  { %502 = vmatprep.subr.bf16.mxu0 %v618_v1  ;;  %536 = vmatprep.mubr.msk.bf16.mxu1 %vm619_vm0, %v618_v1  ;;  %v570_v7 = vld [vmem:[%s787_s2 + $0x20] sm:$0xff]   ;;  %v576_v8 = vld [vmem:[%s790_s5 + $0x10] sm:$0xff]   ;;  %v571_v9 = vld [vmem:[%s787_s2 + $0x28] sm:$0xff]  }
   0x4   :  { %521 = vmatpush3.bf16.msra.mxu1 %v574_v4  ;;  %v578_v10 = vld [vmem:[%s790_s5 + $0x18] sm:$0xff]   ;;  %v572_v11 = vld [vmem:[%s787_s2 + $0x30] sm:$0xff]   ;;  %v580_v12 = vld [vmem:[%s790_s5 + $0x20] sm:$0xff]  }
   0x5   :  { %522 = vmatprep.subr.bf16.mxu1 %v618_v1 }
   0x6   :  { %503 = vmatpush3.bf16.msra.mxu0 %v567_v2 }
   0x7   :  { %504 = vmatprep.subr.bf16.mxu0 %v618_v1 }
   0x8   :  { %523 = vmatpush3.bf16.msra.mxu1 %v575_v6 }
   0x9   :  { %524 = vmatprep.subr.bf16.mxu1 %v618_v1 }
   0xa   :  { %505 = vmatpush3.bf16.msra.mxu0 %v568_v3 }
   0xb   :  { %506 = vmatprep.subr.bf16.mxu0 %v618_v1 }
   0xc   :  { %525 = vmatpush3.bf16.msra.mxu1 %v576_v8 }
   0xd   :  { %526 = vmatprep.subr.bf16.mxu1 %v618_v1 }
   0xe   :  { %507 = vmatpush3.bf16.msra.mxu0 %v569_v5 }
   0xf   :  { %508 = vmatprep.subr.bf16.mxu0 %v618_v1 }
  0x10   :  { %527 = vmatpush3.bf16.msra.mxu1 %v578_v10 }
  0x11   :  { %528 = vmatprep.subr.bf16.mxu1 %v618_v1 }
  0x12   :  { %509 = vmatpush3.bf16.msra.mxu0 %v570_v7 }
  0x13   :  { %510 = vmatprep.subr.bf16.mxu0 %v618_v1 }
  0x16   :  { %511 = vmatpush3.bf16.msra.mxu0 %v571_v9 }
  0x17   :  { %512 = vmatprep.subr.bf16.mxu0 %v618_v1 }
  0x18   :  { %11 = vsyncpa [#allocation3], 0  ;;  %v573_v13 = vld [vmem:[%s787_s2 + $0x38] sm:$0xff]   ;;  %v25_v14 = vld [vmem:[%s785_s0] sm:$0x3]  ;;  %529 = vmatpush3.bf16.msra.mxu1 %v580_v12  ;;  %v241_v32 = vlaneseq  ;;  %s621_s24 = smov [#allocation2]  }
  0x19   :  { %v582_v15 = vld [vmem:[%s790_s5 + $0x28] sm:$0xff]   ;;  %530 = vmatprep.subr.bf16.mxu1 %v618_v1  ;;  %v28_v16 = vpack.c.bf16 %v25_v14, %v25_v14  ;;  %v577_v17 = vld [vmem:[%s789_s4] sm:$0xff]   ;;  %v584_v18 = vld [vmem:[%s790_s5 + $0x30] sm:$0xff]   ;;  %v620_v30 = vmov 1966171168   ;;  %s437_s25 = sshll.u32 %s621_s24, 4  ;;  %s438_s25 = int_to_ptr.vmem [resolvable:$true] %s437_s25 }
  0x1a   :  { %513 = vmatpush3.bf16.msra.mxu0 %v572_v11  ;;  %v579_v19 = vld [vmem:[%s789_s4 + $0x8] sm:$0xff]   ;;  %v586_v20 = vld [vmem:[%s790_s5 + $0x38] sm:$0xff]   ;;  %v581_v21 = vld [vmem:[%s789_s4 + $0x10] sm:$0xff]   ;;  %v239_v31 = vunpack.c.l.s4 %v620_v30  ;;  %v242_v34 = vshrl.u32 %v241_v32, 7  ;;  %p599_p1 = scmp.lt.s32.totalorder %s438_s25, %s438_s25 }
  0x1b   :  { %514 = vmatprep.subr.bf16.mxu0 %v618_v1  ;;  %v583_v22 = vld [vmem:[%s789_s4 + $0x18] sm:$0xff]   ;;  %v585_v23 = vld [vmem:[%s789_s4 + $0x20] sm:$0xff]   ;;  %v587_v24 = vld [vmem:[%s789_s4 + $0x28] sm:$0xff]  }
  0x1c   :  { %531 = vmatpush3.bf16.msra.mxu1 %v582_v15  ;;  %v588_v25 = vld [vmem:[%s789_s4 + $0x30] sm:$0xff]   ;;  %v589_v26 = vld [vmem:[%s789_s4 + $0x38] sm:$0xff]   ;;  %v26_v27 = vld [vmem:[%s786_s1] sm:$0xff]  ;;  %v240_v33 = vunpack.c.0.s8 %v239_v31  ;;  %v262_v38 = vsub.s32 0, %v242_v34 }
  0x1d   :  { %532 = vmatprep.subr.bf16.mxu1 %v618_v1  ;;  %v27_v28 = vld [vmem:[%s786_s1 + $0x8] sm:$0xff]  ;;  %v464_v56 = vld [vmem:[%s788_s3] ss:$0 sm:$0xff]  ;;  %s594_s3 = scalar_lea.vmem %s438_s25, 256 }
  0x1e   :  { %515 = vmatpush3.bf16.msra.mxu0 %v573_v13  ;;  %v287_v29 = vpack.c.bf16 %v27_v28, %v26_v27  ;;  %v243_v35 = vsub.s32 %v240_v33, %v242_v34  ;;  %p595_p0 = scmp.ne.s32.totalorder %s438_s25, %s594_s3  ;;  %p600_p2 = scmp.lt.s32.totalorder %s594_s3, %s594_s3 }
  0x1f   :  { %540 = vmatprep.subr.bf16.mxu0 %v618_v1 }
  0x20   :  { %533 = vmatpush3.bf16.msra.mxu1 %v584_v18  ;;  %p601_p3 = por %p600_p2, %p599_p1 }
  0x21   :  { %517 = vmatmul.mubr.bf16.vlgmr.msra.gmra.mrb[0].mxu0 %v28_v16  ;;  %534 = vmatprep.subr.bf16.mxu1 %v618_v1 }
  0x22   :  { %541 = vmatpush3.bf16.msra.mxu0 %v577_v17  ;;  %556 = vmatprep.mubr.msk.bf16.mxu0 %vm619_vm0, %v618_v1  ;;  %p602_p4 = pnand %p601_p3, %p595_p0 }
  0x23   :  { %542 = vmatprep.subr.bf16.mxu0 %v618_v1 }
  0x24   :  { %535 = vmatpush3.bf16.msra.mxu1 %v586_v20 }
  0x26   :  { %543 = vmatpush3.bf16.msra.mxu0 %v579_v19 }
  0x27   :  { %544 = vmatprep.subr.bf16.mxu0 %v618_v1  ;;  %537 = vmatmul.mubr.bf16.vlgmr.msra.gmra.mrb[0].mxu1 %v28_v16 }
  0x2a   :  { %545 = vmatpush3.bf16.msra.mxu0 %v581_v21 }
  0x2b   :  { %546 = vmatprep.subr.bf16.mxu0 %v618_v1 }
  0x2e   :  { %547 = vmatpush3.bf16.msra.mxu0 %v583_v22 }
  0x2f   :  { %548 = vmatprep.subr.bf16.mxu0 %v618_v1 }
  0x32   :  { %549 = vmatpush3.bf16.msra.mxu0 %v585_v23 }
  0x33   :  { %550 = vmatprep.subr.bf16.mxu0 %v618_v1 }
  0x36   :  { %551 = vmatpush3.bf16.msra.mxu0 %v587_v24 }
  0x37   :  { %552 = vmatprep.subr.bf16.mxu0 %v618_v1 }
  0x3a   :  { %553 = vmatpush3.bf16.msra.mxu0 %v588_v25 }
  0x3b   :  { %554 = vmatprep.subr.bf16.mxu0 %v618_v1 }
  0x3e   :  { %555 = vmatpush3.bf16.msra.mxu0 %v589_v26 }
  0x41   :  { %557 = vmatmul.mubr.bf16.vlgmr.msra.gmra.mrb[4].mxu0 %v287_v29 }
  0xf4   :  { %v127_v36 = vpop.f32.mrb[0].mxu0 }
  0xf5   :  { %v244_v37 = vrot.slane %v127_v36, %v243_v35  ;;  %v518_v39 = vpop.f32.mrb[1].mxu0 }
  0xf6   :  { %v130_v40 = vpop.f32.mrb[2].mxu0 }
  0xf7   :  { %v245_v41 = vcombine.high %v244_v37, %v244_v37  ;;  %v252_v42 = vrot.slane %v244_v37, %v243_v35  ;;  %v519_v43 = vpop.f32.mrb[3].mxu0 }
  0xf9   :  { %v259_v44 = vrot.slane %v245_v41, %v243_v35  ;;  %v263_v45 = vrot.slane %v252_v42, %v262_v38 }
  0xfa   :  { %v231_v49 = vpop.f32.mrb[0].mxu1 }
  0xfb   :  { %v267_v46 = vrot.slane %v259_v44, %v262_v38  ;;  %v270_v47 = vadd.f32 %v263_v45, %v26_v27  ;;  %v400_v50 = vrot.slane %v231_v49, %v243_v35  ;;  %v538_v51 = vpop.f32.mrb[1].mxu1 }
  0xfc   :  { %v234_v52 = vpop.f32.mrb[2].mxu1 }
  0xfd   :  { %v271_v48 = vadd.f32 %v267_v46, %v27_v28  ;;  %590 = vtanh.f32 %v270_v47  ;;  %v408_v53 = vrot.slane %v400_v50, %v243_v35  ;;  %v539_v54 = vpop.f32.mrb[3].mxu1  ;;  %v401_v61 = vcombine.high %v400_v50, %v400_v50 }
  0xff   :  { %592 = vtanh.f32 %v271_v48  ;;  %v419_v55 = vrot.slane %v408_v53, %v262_v38  ;;  %v415_v63 = vrot.slane %v401_v61, %v243_v35 }
 0x101   :  { %v423_v2 = vrot.slane %v415_v63, %v262_v38 }
 0x107   :  { %v591_v57 = vpop.eup %590 }
 0x108   :  { %v281_v58 = vmul.f32 %v591_v57, %v464_v56 }
 0x109   :  { %v593_v59 = vpop.eup %592 }
 0x10a   :  { %283 = vadd.xlane.f32.xlu0 %v281_v58  ;;  %v282_v60 = vmul.f32 %v593_v59, %v464_v56 }
 0x10e   :  { %285 = vadd.xlane.f32.xlu0 %v282_v60 }
 0x114   :  { %v386_v62 = vpop.f32.mrb[4].mxu0 }
 0x115   :  { %v558_v0 = vpop.f32.mrb[5].mxu0 }
 0x116   :  { %v389_v1 = vpop.f32.mrb[6].mxu0 }
 0x117   :  { %v559_v3 = vpop.f32.mrb[7].mxu0 }
 0x197   :  { %v284_v4 = vpop.xlane.xlu0 %283 }
 0x198   :  { %v426_v5 = vmul.f32 %v419_v55, %v284_v4 }
 0x19a   :  { %v428_v6 = vadd.f32 %v426_v5, %v386_v62 }
 0x19b   :  { %v286_v7 = vpop.xlane.xlu0 %285 }
 0x19c   :  { %430 = vst [vmem:[#allocation2] sm:$0xff] %v428_v6  ;;  %v427_v8 = vmul.f32 %v423_v2, %v286_v7 }
 0x19e   :  { %v429_v9 = vadd.f32 %v427_v8, %v389_v1 }
 0x1a0   :  { %431 = vst [vmem:[#allocation2 + $0x8] sm:$0xff] %v429_v9 }
 0x1a1   :  { %605 = shalt.err (!%p602_p4)
}
 0x1a2   :  { %s606_s28 = scalar_lea.hbm %s791_s6, 256 }
 0x1a3   :  { %p607_p5 = scmp.ne.s32.totalorder %s791_s6, %s606_s28  ;;  %p610_p6 = scmp.lt.u32.totalorder %s606_s28, %s791_s6 }
 0x1a5   :  { %p612_p7 = pnand %p610_p6, %p607_p5 }
 0x1a7   :  { %615 = shalt.err (!%p612_p7)
}
 0x1a8   :  { %s622_s7 = smov 128   ;;  %s623_s8 = smov 8  }
 0x1a9   :  { %443 = dma.vmem_to_hbm [thread:$0]  %s438_s25, 256, %s791_s6, [#allocation3], %s622_s7, %s622_s7, %s623_s8  }
 0x1aa   :  { %616 = dma.done.wait [#allocation3], 256  }
 0x1ab   :  { %617 = vsyncadd [#allocation3], 4294967040 }
 0x1ac   :  { %447 = vsyncpa [#allocation3], 1 }

</bundles_post_ra>
